<compile_context>
chip_gen: v5e
topology: v5e:2x2
jax: 0.10.0
libtpu: 0.0.40
codegen_flags: <defaults>
</compile_context>

<pallas_src>
import functools

import jax
import jax.numpy as jnp
from jax.experimental import pallas as pl
from jax.experimental.pallas import tpu as pltpu

# ---- Module config (mirrors LinearSplineSlopeConstrained.__init__) ----------
MODE = "fc"
NUM_ACTIVATIONS = 32     # C  (fc "hidden" width)
SIZE = 9                 # number of nodal values per activation
RANGE_ = 2.0             # spline support [-range_, range_]
INIT = "relu"
SMIN = 0.05
SMAX = 1.0
SLOPE_CONSTRAINED = True
UNIFORM_GRID = True

MAX_TILE_ROWS = 2048     # (2048, 128) f32 block = 1 MiB; x+out double-buffered ~4 MiB


def make_params():
    """Deterministic parameter init, exactly as the module's __init__ would."""
    knots_1d = jnp.linspace(-RANGE_, RANGE_, SIZE, dtype=jnp.float32)
    knots = jnp.broadcast_to(knots_1d, (NUM_ACTIVATIONS, SIZE))
    coeffs = jax.nn.relu(knots)                     # initialize_coeffs('relu')
    coefficients_vect = coeffs.reshape(-1)
    scaling = jnp.ones((NUM_ACTIVATIONS,), dtype=jnp.float32)
    return knots, coefficients_vect, scaling


def project_slopes_vectorized(nodal_values, knot_positions, smin, smax):
    """JAX port of the torch helper (parameter preprocessing; outside kernel)."""
    delta_f = nodal_values[:, 1:] - nodal_values[:, :-1]
    delta_t = knot_positions[:, 1:] - knot_positions[:, :-1]
    inner_slopes = delta_f / delta_t                        # slopes[:, 1:]
    slopes = jnp.concatenate([inner_slopes[:, :1], inner_slopes], axis=1)
    clipped = jnp.clip(slopes, smin, smax)
    increments = clipped[:, :-1] * delta_t
    new_vals = jnp.concatenate(
        [nodal_values[:, :1],
         nodal_values[:, :1] + jnp.cumsum(increments, axis=1)], axis=1)
    mean_adjustment = jnp.mean(nodal_values) - jnp.mean(new_vals)
    return new_vals + mean_adjustment


def _pick_tile_rows(rows):
    """Block rows: multiple of 8 (or full dim), <= MAX_TILE_ROWS, and >= 2 grid
    steps whenever rows > 8 so the 'parallel' axis shards across v7x's 2 TCs."""
    if rows <= 8:
        return rows                      # single full-extent block
    half = -(-rows // 2)
    half_rounded = -(-half // 8) * 8     # round up to a sublane multiple
    return min(MAX_TILE_ROWS, half_rounded)


# ----------------------------- Pallas kernel ---------------------------------
def linear_spline_kernel(x_ref, scale_ref, a_ref, b_ref, o_ref, *, thresholds):
    # x_ref/o_ref: (TR, 128); a_ref/b_ref: (size-1, 128); scale_ref: (1, 128).
    shape = x_ref.shape
    xs = x_ref[...] * jnp.broadcast_to(scale_ref[...], shape)   # x.mul(scaling)

    # Monotone strict-compare select chain over per-interval affine tables.
    # Strict '>' reproduces torch.searchsorted (right=False) + clamp exactly:
    #   xs <= t_1           -> interval 0          (left clamp incl. xs == t_0)
    #   t_k < xs <= t_{k+1}  -> interval k
    #   xs > t_{size-2}      -> interval size-2     (right clamp)
    # Each table row is bound (broadcast) once so every chain step is one
    # compare + two selects on the VPU.
    a = jnp.broadcast_to(a_ref[0:1, :], shape)
    b = jnp.broadcast_to(b_ref[0:1, :], shape)
    for k, t_k in enumerate(thresholds, start=1):
        m = xs > t_k                                   # compile-time scalar knot
        a = jnp.where(m, jnp.broadcast_to(a_ref[k:k + 1, :], shape), a)
        b = jnp.where(m, jnp.broadcast_to(b_ref[k:k + 1, :], shape), b)

    # (c_left*frac + c_right*(1-frac)) / scaling  ==  a*xs + b  (1/scaling folded
    # into the a/b tables in the wrapper).
    o_ref[...] = a * xs + b


# ------------------------------ Wrapper ---------------------------------------
@jax.jit
def linear_spline_forward(x, knots, coefficients_vect, scaling):
    """x: (N, C) float32 for mode='fc'. Returns (N, C) float32."""
    n, c = x.shape
    size = knots.shape[1]
    assert UNIFORM_GRID, "analytic interval thresholds require a uniform knot grid"
    # TODO(synk): non-uniform / learned knot grids need per-lane thresholds
    # (knots resident in VMEM) instead of compile-time scalar thresholds.
    assert 128 % c == 0, "lane folding requires num_activations to divide 128"

    coeffs = coefficients_vect.reshape(c, size)
    if SLOPE_CONSTRAINED:
        coeffs = project_slopes_vectorized(coeffs, knots, SMIN, SMAX)

    # Per-interval affine tables (module convention c_left*frac + c_right*(1-frac)):
    #   y_k(xs) = A_k*xs + B_k,  A_k = (c_k - c_{k+1})/h,  B_k = c_{k+1} - A_k*t_k,
    # with the trailing /scaling folded in (assumes scaling != 0, as the module does).
    h = 2.0 * RANGE_ / (size - 1)
    inv_h = 1.0 / h
    a_tab = (coeffs[:, :-1] - coeffs[:, 1:]) * inv_h            # (c, size-1)
    b_tab = coeffs[:, 1:] - a_tab * knots[:, :-1]               # (c, size-1)
    inv_scale = 1.0 / scaling
    a_tab = a_tab * inv_scale[:, None]
    b_tab = b_tab * inv_scale[:, None]

    # Lane-tiled per-channel constants: lane j carries channel j % C.
    rep = 128 // c
    a_l = jnp.tile(a_tab.T, (1, rep)).astype(jnp.float32)       # (size-1, 128)
    b_l = jnp.tile(b_tab.T, (1, rep)).astype(jnp.float32)       # (size-1, 128)
    scale_l = jnp.tile(scaling.reshape(1, c), (1, rep)).astype(jnp.float32)

    # Interior knot thresholds t_1 .. t_{size-2} as compile-time scalars
    # (exact for the uniform grid: t_k = -range_ + k*h, h = 0.5 here).
    thresholds = tuple(float(-RANGE_ + k * h) for k in range(1, size - 1))

    # Lane-dense fold: (N, C) row-major -> (rows, 128).  Free reshape (no HBM
    # copy) when N*C is a multiple of 128 -- the common case for C=32.
    total = n * c
    rows = -(-total // 128)
    if total % 128 == 0:
        x_fold = x.reshape(rows, 128)
        pad = 0
    else:
        # TODO(synk): ragged tail still pays a full pad copy + output slice;
        # avoidable with an in-kernel masked tail if this path ever matters.
        pad = rows * 128 - total
        x_fold = jnp.pad(x.reshape(-1), (0, pad)).reshape(rows, 128)

    tile_rows = _pick_tile_rows(rows)
    grid = (pl.cdiv(rows, tile_rows),)

    out_fold = pl.pallas_call(
        functools.partial(linear_spline_kernel, thresholds=thresholds),
        out_shape=jax.ShapeDtypeStruct((rows, 128), jnp.float32),
        grid=grid,
        in_specs=[
            pl.BlockSpec((tile_rows, 128), lambda i: (i, 0)),
            pl.BlockSpec((1, 128), lambda i: (0, 0)),
            pl.BlockSpec((size - 1, 128), lambda i: (0, 0)),
            pl.BlockSpec((size - 1, 128), lambda i: (0, 0)),
        ],
        out_specs=pl.BlockSpec((tile_rows, 128), lambda i: (i, 0)),
        compiler_params=pltpu.CompilerParams(
            dimension_semantics=("parallel",)),
    )(x_fold, scale_l, a_l, b_l)

    if pad == 0:
        return out_fold.reshape(n, c)
    return out_fold.reshape(-1)[:total].reshape(n, c)


# --------------------------- Pure-JAX reference --------------------------------
def reference_forward(x, knots, coefficients_vect, scaling):
    """Direct port of the torch forward (searchsorted + gather + reversed lerp)."""
    c, size = knots.shape
    coeffs = coefficients_vect.reshape(c, size)
    if SLOPE_CONSTRAINED:
        coeffs = project_slopes_vectorized(coeffs, knots, SMIN, SMAX)
    xs = x * scaling[None, :]
    xt = xs.T                                                     # (C, N)
    cnt = jnp.sum(knots[:, :, None] < xt[:, None, :], axis=1)     # searchsorted
    left = jnp.clip(cnt - 1, 0, size - 2)
    lv = jnp.take_along_axis(knots, left, axis=1)
    rv = jnp.take_along_axis(knots, left + 1, axis=1)
    cl = jnp.take_along_axis(coeffs, left, axis=1)
    cr = jnp.take_along_axis(coeffs, left + 1, axis=1)
    frac = (xt - lv) / (rv - lv)
    out = cl * frac + cr * (1.0 - frac)
    return (out / scaling[:, None]).T


if __name__ == "__main__":
    knots, coefficients_vect, scaling = make_params()

    # Case 1: lane-aligned batch (fast path, no pad/slice copies), including
    # values exactly on knots (searchsorted tie-breaking) and outside the range.
    x = jax.random.uniform(jax.random.PRNGKey(0), (8, NUM_ACTIVATIONS),
                           dtype=jnp.float32, minval=-3.0, maxval=3.0)
    x = x.at[0, :SIZE].set(knots[0])
    out = jax.block_until_ready(
        linear_spline_forward(x, knots, coefficients_vect, scaling))
    ref = reference_forward(x, knots, coefficients_vect, scaling)
    assert out.shape == x.shape and out.dtype == jnp.float32
    assert jnp.allclose(out, ref, atol=1e-5, rtol=1e-5)

    # Case 2: larger batch -> multi-step "parallel" grid (2 blocks of 64 rows).
    x2 = jax.random.uniform(jax.random.PRNGKey(1), (512, NUM_ACTIVATIONS),
                            dtype=jnp.float32, minval=-3.0, maxval=3.0)
    out2 = jax.block_until_ready(
        linear_spline_forward(x2, knots, coefficients_vect, scaling))
    ref2 = reference_forward(x2, knots, coefficients_vect, scaling)
    assert jnp.allclose(out2, ref2, atol=1e-5, rtol=1e-5)

    # Case 3: ragged batch (N*C % 128 != 0) -> pad fallback path.
    x3 = jax.random.uniform(jax.random.PRNGKey(2), (5, NUM_ACTIVATIONS),
                            dtype=jnp.float32, minval=-3.0, maxval=3.0)
    out3 = jax.block_until_ready(
        linear_spline_forward(x3, knots, coefficients_vect, scaling))
    ref3 = reference_forward(x3, knots, coefficients_vect, scaling)
    assert jnp.allclose(out3, ref3, atol=1e-5, rtol=1e-5)

    print("KERNEL_OK")
</pallas_src>

<mosaic_0001>
module attributes {stable_mosaic.version = 11 : i64} {
  func.func @linear_spline_kernel(%arg0: i32, %arg1: memref<2x128xf32, #tpu.memory_space<vmem>>, %arg2: memref<1x128xf32, #tpu.memory_space<vmem>>, %arg3: memref<8x128xf32, #tpu.memory_space<vmem>>, %arg4: memref<8x128xf32, #tpu.memory_space<vmem>>, %arg5: memref<2x128xf32, #tpu.memory_space<vmem>>) attributes {dimension_semantics = [#tpu.dimension_semantics<parallel>], iteration_bounds = array<i64: 1>, scalar_prefetch = 0 : i64, scratch_operands = 0 : i64, tpu.core_type = #tpu.core_type<tc>, window_params = [{transform_indices = @transform_0, window_bounds = array<i64: 2, 128>}, {pipeline_mode = #tpu.pipeline_mode<synchronous>, transform_indices = @transform_1, window_bounds = array<i64: 1, 128>}, {pipeline_mode = #tpu.pipeline_mode<synchronous>, transform_indices = @transform_2, window_bounds = array<i64: 8, 128>}, {pipeline_mode = #tpu.pipeline_mode<synchronous>, transform_indices = @transform_3, window_bounds = array<i64: 8, 128>}, {transform_indices = @transform_4, window_bounds = array<i64: 2, 128>}]} {
    %c0 = arith.constant 0 : index
    %c0_0 = arith.constant 0 : index
    %0 = vector.load %arg1[%c0, %c0_0] : memref<2x128xf32, #tpu.memory_space<vmem>>, vector<2x128xf32>
    %c0_1 = arith.constant 0 : index
    %c0_2 = arith.constant 0 : index
    %1 = vector.load %arg2[%c0_1, %c0_2] : memref<1x128xf32, #tpu.memory_space<vmem>>, vector<1x128xf32>
    %2 = vector.shape_cast %1 : vector<1x128xf32> to vector<1x128xf32>
    %3 = vector.broadcast %2 : vector<1x128xf32> to vector<2x128xf32>
    %4 = arith.mulf %0, %3 : vector<2x128xf32>
    %c0_3 = arith.constant 0 : index
    %c0_4 = arith.constant 0 : index
    %5 = vector.load %arg3[%c0_3, %c0_4] : memref<8x128xf32, #tpu.memory_space<vmem>>, vector<1x128xf32>
    %6 = vector.shape_cast %5 : vector<1x128xf32> to vector<1x128xf32>
    %7 = vector.broadcast %6 : vector<1x128xf32> to vector<2x128xf32>
    %c0_5 = arith.constant 0 : index
    %c0_6 = arith.constant 0 : index
    %8 = vector.load %arg4[%c0_5, %c0_6] : memref<8x128xf32, #tpu.memory_space<vmem>>, vector<1x128xf32>
    %9 = vector.shape_cast %8 : vector<1x128xf32> to vector<1x128xf32>
    %10 = vector.broadcast %9 : vector<1x128xf32> to vector<2x128xf32>
    %cst = arith.constant -1.500000e+00 : f32
    %11 = vector.broadcast %cst : f32 to vector<2x128xf32>
    %12 = arith.cmpf ogt, %4, %11 : vector<2x128xf32>
    %c1 = arith.constant 1 : index
    %c0_7 = arith.constant 0 : index
    %13 = vector.load %arg3[%c1, %c0_7] : memref<8x128xf32, #tpu.memory_space<vmem>>, vector<1x128xf32>
    %14 = vector.shape_cast %13 : vector<1x128xf32> to vector<1x128xf32>
    %15 = vector.broadcast %14 : vector<1x128xf32> to vector<2x128xf32>
    %16 = arith.select %12, %15, %7 : vector<2x128xi1>, vector<2x128xf32>
    %c1_8 = arith.constant 1 : index
    %c0_9 = arith.constant 0 : index
    %17 = vector.load %arg4[%c1_8, %c0_9] : memref<8x128xf32, #tpu.memory_space<vmem>>, vector<1x128xf32>
    %18 = vector.shape_cast %17 : vector<1x128xf32> to vector<1x128xf32>
    %19 = vector.broadcast %18 : vector<1x128xf32> to vector<2x128xf32>
    %20 = arith.select %12, %19, %10 : vector<2x128xi1>, vector<2x128xf32>
    %cst_10 = arith.constant -1.000000e+00 : f32
    %21 = vector.broadcast %cst_10 : f32 to vector<2x128xf32>
    %22 = arith.cmpf ogt, %4, %21 : vector<2x128xf32>
    %c2 = arith.constant 2 : index
    %c0_11 = arith.constant 0 : index
    %23 = vector.load %arg3[%c2, %c0_11] : memref<8x128xf32, #tpu.memory_space<vmem>>, vector<1x128xf32>
    %24 = vector.shape_cast %23 : vector<1x128xf32> to vector<1x128xf32>
    %25 = vector.broadcast %24 : vector<1x128xf32> to vector<2x128xf32>
    %26 = arith.select %22, %25, %16 : vector<2x128xi1>, vector<2x128xf32>
    %c2_12 = arith.constant 2 : index
    %c0_13 = arith.constant 0 : index
    %27 = vector.load %arg4[%c2_12, %c0_13] : memref<8x128xf32, #tpu.memory_space<vmem>>, vector<1x128xf32>
    %28 = vector.shape_cast %27 : vector<1x128xf32> to vector<1x128xf32>
    %29 = vector.broadcast %28 : vector<1x128xf32> to vector<2x128xf32>
    %30 = arith.select %22, %29, %20 : vector<2x128xi1>, vector<2x128xf32>
    %cst_14 = arith.constant -5.000000e-01 : f32
    %31 = vector.broadcast %cst_14 : f32 to vector<2x128xf32>
    %32 = arith.cmpf ogt, %4, %31 : vector<2x128xf32>
    %c3 = arith.constant 3 : index
    %c0_15 = arith.constant 0 : index
    %33 = vector.load %arg3[%c3, %c0_15] : memref<8x128xf32, #tpu.memory_space<vmem>>, vector<1x128xf32>
    %34 = vector.shape_cast %33 : vector<1x128xf32> to vector<1x128xf32>
    %35 = vector.broadcast %34 : vector<1x128xf32> to vector<2x128xf32>
    %36 = arith.select %32, %35, %26 : vector<2x128xi1>, vector<2x128xf32>
    %c3_16 = arith.constant 3 : index
    %c0_17 = arith.constant 0 : index
    %37 = vector.load %arg4[%c3_16, %c0_17] : memref<8x128xf32, #tpu.memory_space<vmem>>, vector<1x128xf32>
    %38 = vector.shape_cast %37 : vector<1x128xf32> to vector<1x128xf32>
    %39 = vector.broadcast %38 : vector<1x128xf32> to vector<2x128xf32>
    %40 = arith.select %32, %39, %30 : vector<2x128xi1>, vector<2x128xf32>
    %cst_18 = arith.constant 0.000000e+00 : f32
    %41 = vector.broadcast %cst_18 : f32 to vector<2x128xf32>
    %42 = arith.cmpf ogt, %4, %41 : vector<2x128xf32>
    %c4 = arith.constant 4 : index
    %c0_19 = arith.constant 0 : index
    %43 = vector.load %arg3[%c4, %c0_19] : memref<8x128xf32, #tpu.memory_space<vmem>>, vector<1x128xf32>
    %44 = vector.shape_cast %43 : vector<1x128xf32> to vector<1x128xf32>
    %45 = vector.broadcast %44 : vector<1x128xf32> to vector<2x128xf32>
    %46 = arith.select %42, %45, %36 : vector<2x128xi1>, vector<2x128xf32>
    %c4_20 = arith.constant 4 : index
    %c0_21 = arith.constant 0 : index
    %47 = vector.load %arg4[%c4_20, %c0_21] : memref<8x128xf32, #tpu.memory_space<vmem>>, vector<1x128xf32>
    %48 = vector.shape_cast %47 : vector<1x128xf32> to vector<1x128xf32>
    %49 = vector.broadcast %48 : vector<1x128xf32> to vector<2x128xf32>
    %50 = arith.select %42, %49, %40 : vector<2x128xi1>, vector<2x128xf32>
    %cst_22 = arith.constant 5.000000e-01 : f32
    %51 = vector.broadcast %cst_22 : f32 to vector<2x128xf32>
    %52 = arith.cmpf ogt, %4, %51 : vector<2x128xf32>
    %c5 = arith.constant 5 : index
    %c0_23 = arith.constant 0 : index
    %53 = vector.load %arg3[%c5, %c0_23] : memref<8x128xf32, #tpu.memory_space<vmem>>, vector<1x128xf32>
    %54 = vector.shape_cast %53 : vector<1x128xf32> to vector<1x128xf32>
    %55 = vector.broadcast %54 : vector<1x128xf32> to vector<2x128xf32>
    %56 = arith.select %52, %55, %46 : vector<2x128xi1>, vector<2x128xf32>
    %c5_24 = arith.constant 5 : index
    %c0_25 = arith.constant 0 : index
    %57 = vector.load %arg4[%c5_24, %c0_25] : memref<8x128xf32, #tpu.memory_space<vmem>>, vector<1x128xf32>
    %58 = vector.shape_cast %57 : vector<1x128xf32> to vector<1x128xf32>
    %59 = vector.broadcast %58 : vector<1x128xf32> to vector<2x128xf32>
    %60 = arith.select %52, %59, %50 : vector<2x128xi1>, vector<2x128xf32>
    %cst_26 = arith.constant 1.000000e+00 : f32
    %61 = vector.broadcast %cst_26 : f32 to vector<2x128xf32>
    %62 = arith.cmpf ogt, %4, %61 : vector<2x128xf32>
    %c6 = arith.constant 6 : index
    %c0_27 = arith.constant 0 : index
    %63 = vector.load %arg3[%c6, %c0_27] : memref<8x128xf32, #tpu.memory_space<vmem>>, vector<1x128xf32>
    %64 = vector.shape_cast %63 : vector<1x128xf32> to vector<1x128xf32>
    %65 = vector.broadcast %64 : vector<1x128xf32> to vector<2x128xf32>
    %66 = arith.select %62, %65, %56 : vector<2x128xi1>, vector<2x128xf32>
    %c6_28 = arith.constant 6 : index
    %c0_29 = arith.constant 0 : index
    %67 = vector.load %arg4[%c6_28, %c0_29] : memref<8x128xf32, #tpu.memory_space<vmem>>, vector<1x128xf32>
    %68 = vector.shape_cast %67 : vector<1x128xf32> to vector<1x128xf32>
    %69 = vector.broadcast %68 : vector<1x128xf32> to vector<2x128xf32>
    %70 = arith.select %62, %69, %60 : vector<2x128xi1>, vector<2x128xf32>
    %cst_30 = arith.constant 1.500000e+00 : f32
    %71 = vector.broadcast %cst_30 : f32 to vector<2x128xf32>
    %72 = arith.cmpf ogt, %4, %71 : vector<2x128xf32>
    %c7 = arith.constant 7 : index
    %c0_31 = arith.constant 0 : index
    %73 = vector.load %arg3[%c7, %c0_31] : memref<8x128xf32, #tpu.memory_space<vmem>>, vector<1x128xf32>
    %74 = vector.shape_cast %73 : vector<1x128xf32> to vector<1x128xf32>
    %75 = vector.broadcast %74 : vector<1x128xf32> to vector<2x128xf32>
    %76 = arith.select %72, %75, %66 : vector<2x128xi1>, vector<2x128xf32>
    %c7_32 = arith.constant 7 : index
    %c0_33 = arith.constant 0 : index
    %77 = vector.load %arg4[%c7_32, %c0_33] : memref<8x128xf32, #tpu.memory_space<vmem>>, vector<1x128xf32>
    %78 = vector.shape_cast %77 : vector<1x128xf32> to vector<1x128xf32>
    %79 = vector.broadcast %78 : vector<1x128xf32> to vector<2x128xf32>
    %80 = arith.select %72, %79, %70 : vector<2x128xi1>, vector<2x128xf32>
    %81 = arith.mulf %76, %4 : vector<2x128xf32>
    %82 = arith.addf %81, %80 : vector<2x128xf32>
    %c0_34 = arith.constant 0 : index
    %c0_35 = arith.constant 0 : index
    %83 = vector.load %arg5[%c0_34, %c0_35] : memref<2x128xf32, #tpu.memory_space<vmem>>, vector<2x128xf32>
    tpu.vector_store %arg5[%c0_34, %c0_35], %82 {strides = array<i32>} : memref<2x128xf32, #tpu.memory_space<vmem>>, vector<2x128xf32>,
    return
  }
  func.func @transform_0(%arg0: i32) -> (i32, i32) {
    %c0_i32 = arith.constant 0 : i32
    %c0_i32_0 = arith.constant 0 : i32
    return %arg0, %c0_i32 : i32, i32
  }
  func.func @transform_1(%arg0: i32) -> (i32, i32) {
    %c0_i32 = arith.constant 0 : i32
    %c0_i32_0 = arith.constant 0 : i32
    %c0_i32_1 = arith.constant 0 : i32
    return %c0_i32, %c0_i32_0 : i32, i32
  }
  func.func @transform_2(%arg0: i32) -> (i32, i32) {
    %c0_i32 = arith.constant 0 : i32
    %c0_i32_0 = arith.constant 0 : i32
    %c0_i32_1 = arith.constant 0 : i32
    return %c0_i32, %c0_i32_0 : i32, i32
  }
  func.func @transform_3(%arg0: i32) -> (i32, i32) {
    %c0_i32 = arith.constant 0 : i32
    %c0_i32_0 = arith.constant 0 : i32
    %c0_i32_1 = arith.constant 0 : i32
    return %c0_i32, %c0_i32_0 : i32, i32
  }
  func.func @transform_4(%arg0: i32) -> (i32, i32) {
    %c0_i32 = arith.constant 0 : i32
    %c0_i32_0 = arith.constant 0 : i32
    return %arg0, %c0_i32 : i32, i32
  }
}

</mosaic_0001>

<bundles_post_ra>
// kernel: tile.18
= control target key start
LH: loop header
LB: loop body
LE: loop exit
PB: predicated region body
PF: predicated region fallthrough
CT: control target
= control target key end

     0   :  { %vm36_vm0 = vcmask 1047556   ;;  %s81_s22 = smov 32   ;;  %s82_s23 = smov 64   ;;  %vm38_vm1 = vcmask 261120   ;;  %vm48_vm2 = vcmask 1048320   ;;  %vm58_vm3 = vcmask 785920   ;;  %s133_s0 = inlined_call_operand.vmem [shape: f32[8,4,32], index: 0, kind: input, shape index: {}]   ;;  %s134_s1 = inlined_call_operand.vmem [shape: f32[8,128], index: 1, kind: output, shape index: {}]  }
   0x1   :  { %v70_v0 = vld [vmem:[%s133_s0 + $0x1c] sm:$0xf]  ;;  %v71_v1 = vld [vmem:[%s133_s0 + $0x18] sm:$0xf]  ;;  %v72_v2 = vld [vmem:[%s133_s0 + $0x14] sm:$0xf] }
   0x2   :  { %7 = vst [vmem:[#allocation0 + $0x38] sm:$0xf] %v70_v0  ;;  %v73_v3 = vld [vmem:[%s133_s0 + $0x10] sm:$0xf]  ;;  %v74_v4 = vld [vmem:[%s133_s0 + $0xc] sm:$0xf] }
   0x3   :  { %11 = vst [vmem:[#allocation0 + $0x30] sm:$0xf] %v71_v1  ;;  %v75_v5 = vld [vmem:[%s133_s0 + $0x8] sm:$0xf]  ;;  %v76_v6 = vld [vmem:[%s133_s0 + $0x4] sm:$0xf] }
   0x4   :  { %15 = vst [vmem:[#allocation0 + $0x28] sm:$0xf] %v72_v2  ;;  %v32_v7 = vld [vmem:[%s133_s0] sm:$0xf]  ;;  %s80_s0 = smov 96   ;;  %vm68_vm4 = vcmask 523520  }
   0x5   :  { %19 = vst [vmem:[#allocation0 + $0x20] sm:$0xf] %v73_v3 }
   0x6   :  { %23 = vst [vmem:[#allocation0 + $0x18] sm:$0xf] %v74_v4 }
   0x7   :  { %27 = vst [vmem:[#allocation0 + $0x10] sm:$0xf] %v75_v5 }
   0x8   :  { %31 = vst [vmem:[#allocation0 + $0x8] sm:$0xf] %v76_v6 }
   0x9   :  { %33 = vst [vmem:[#allocation0] sm:$0xf] %v32_v7 }
   0xc   :  { %v43_v8 = vld [vmem:[#allocation0 + $0x3] ss:$8 sm:$0xf0]   ;;  %v63_v9 = vld [vmem:[#allocation0 + $0x1] ss:$8 sm:$0xf0]  }
   0xd   :  { %v53_v15 = vld [vmem:[#allocation0 + $0x2] ss:$8 sm:$0xf0]   ;;  %v35_v18 = vld [vmem:[#allocation0] ss:$8 sm:$0xf0]  }
  0x10   :  { %v41_v10 = vld [vmem:[#allocation0 + $0x3] ss:$8 sm:$0xf]   ;;  %v61_v12 = vld [vmem:[#allocation0 + $0x1] ss:$8 sm:$0xf]  }
  0x11   :  { %v45_v11 = vsel %vm36_vm0, %v43_v8, %v41_v10  ;;  %v65_v13 = vsel %vm36_vm0, %v63_v9, %v61_v12  ;;  %v51_v14 = vld [vmem:[#allocation0 + $0x2] ss:$8 sm:$0xf]   ;;  %v34_v17 = vld [vmem:[#allocation0] ss:$8 sm:$0xf]  }
  0x12   :  { %46 = vrot.lane.b32.xlu0 %v45_v11, %s80_s0  ;;  %66 = vrot.lane.b32.xlu1 %v65_v13, %s81_s22  ;;  %v55_v16 = vsel %vm36_vm0, %v53_v15, %v51_v14  ;;  %v37_v19 = vsel %vm36_vm0, %v35_v18, %v34_v17 }
  0x13   :  { %39 = vst.msk [vmem:[%s134_s1] sm:$0xff] %vm38_vm1, %v37_v19  }
  0x1a   :  { %56 = vrot.lane.b32.xlu0 %v55_v16, %s82_s23 }
  0x84   :  { %v47_v20 = vpop.permute.xlu0 %46   ;;  %v67_v21 = vpop.permute.xlu1 %66  }
  0x85   :  { %49 = vst.msk [vmem:[%s134_s1] sm:$0xff] %vm48_vm2, %v47_v20  }
  0x8c   :  { %v57_v22 = vpop.permute.xlu0 %56  }
  0x8d   :  { %59 = vst.msk [vmem:[%s134_s1] sm:$0xff] %vm58_vm3, %v57_v22  }
  0x8e   :  { %69 = vst.msk [vmem:[%s134_s1] sm:$0xff] %vm68_vm4, %v67_v21  }

// kernel: linear_spline_forward.1
= control target key start
LH: loop header
LB: loop body
LE: loop exit
PB: predicated region body
PF: predicated region fallthrough
CT: control target
= control target key end

     0   :  { %s182_s0 = inlined_call_operand.vmem [shape: f32[2,128], index: 0, kind: input, shape index: {}]   ;;  %s183_s1 = inlined_call_operand.vmem [shape: f32[1,128], index: 1, kind: input, shape index: {}]   ;;  %s184_s2 = inlined_call_operand.vmem [shape: f32[8,128], index: 2, kind: input, shape index: {}]   ;;  %s185_s3 = inlined_call_operand.vmem [shape: f32[8,128], index: 3, kind: input, shape index: {}]   ;;  %s186_s4 = inlined_call_operand.vmem [shape: f32[2,128], index: 4, kind: output, shape index: {}]  }
   0x1   :  { %v17_v0 = vld [vmem:[%s182_s0] sm:$0x3]  ;;  %v88_v7 = vld [vmem:[%s184_s2 + $0x2] ss:$0 sm:$0xff]  ;;  %v90_v12 = vld [vmem:[%s184_s2 + $0x3] ss:$0 sm:$0xff] }
   0x2   :  { %v83_v1 = vld [vmem:[%s183_s1] ss:$0 sm:$0xff]  ;;  %v86_v5 = vld [vmem:[%s184_s2 + $0x1] ss:$0 sm:$0xff]  ;;  %v89_v10 = vld [vmem:[%s185_s3 + $0x2] ss:$0 sm:$0xff] }
   0x3   :  { %v84_v2 = vld [vmem:[%s184_s2] ss:$0 sm:$0xff]  ;;  %v22_v3 = vmul.f32 %v83_v1, %v17_v0  ;;  %v87_v6 = vld [vmem:[%s185_s3 + $0x1] ss:$0 sm:$0xff]  ;;  %v91_v13 = vld [vmem:[%s185_s3 + $0x3] ss:$0 sm:$0xff] }
   0x4   :  { %v85_v4 = vld [vmem:[%s185_s3] ss:$0 sm:$0xff]  ;;  %v92_v15 = vld [vmem:[%s184_s2 + $0x4] ss:$0 sm:$0xff]  ;;  %v94_v20 = vld [vmem:[%s184_s2 + $0x5] ss:$0 sm:$0xff] }
   0x5   :  { %vm27_vm0 = vcmp.gt.f32.partialorder %v22_v3, -1.5  ;;  %vm34_vm1 = vcmp.gt.f32.partialorder %v22_v3, -1.0  ;;  %vm41_vm2 = vcmp.gt.f32.partialorder %v22_v3, -0.5  ;;  %vm48_vm3 = vcmp.gt.f32.partialorder %v22_v3, 0.0  ;;  %v93_v18 = vld [vmem:[%s185_s3 + $0x4] ss:$0 sm:$0xff] }
   0x6   :  { %v30_v8 = vsel %vm27_vm0, %v86_v5, %v84_v2  ;;  %v33_v9 = vsel %vm27_vm0, %v87_v6, %v85_v4  ;;  %vm55_vm4 = vcmp.gt.f32.partialorder %v22_v3, 0.5  ;;  %vm62_vm5 = vcmp.gt.f32.partialorder %v22_v3, 1.0  ;;  %v95_v21 = vld [vmem:[%s185_s3 + $0x5] ss:$0 sm:$0xff]  ;;  %v96_v23 = vld [vmem:[%s184_s2 + $0x6] ss:$0 sm:$0xff] }
   0x7   :  { %v37_v11 = vsel %vm34_vm1, %v88_v7, %v30_v8  ;;  %v40_v14 = vsel %vm34_vm1, %v89_v10, %v33_v9  ;;  %v97_v26 = vld [vmem:[%s185_s3 + $0x6] ss:$0 sm:$0xff]  ;;  %vm69_vm6 = vcmp.gt.f32.partialorder %v22_v3, 1.5  ;;  %v98_v28 = vld [vmem:[%s184_s2 + $0x7] ss:$0 sm:$0xff] }
   0x8   :  { %v44_v16 = vsel %vm41_vm2, %v90_v12, %v37_v11  ;;  %v47_v17 = vsel %vm41_vm2, %v91_v13, %v40_v14  ;;  %v99_v29 = vld [vmem:[%s185_s3 + $0x7] ss:$0 sm:$0xff] }
   0x9   :  { %v51_v19 = vsel %vm48_vm3, %v92_v15, %v44_v16  ;;  %v54_v22 = vsel %vm48_vm3, %v93_v18, %v47_v17 }
   0xa   :  { %v58_v24 = vsel %vm55_vm4, %v94_v20, %v51_v19  ;;  %v61_v25 = vsel %vm55_vm4, %v95_v21, %v54_v22 }
   0xb   :  { %v65_v27 = vsel %vm62_vm5, %v96_v23, %v58_v24  ;;  %v68_v30 = vsel %vm62_vm5, %v97_v26, %v61_v25 }
   0xc   :  { %v72_v31 = vsel %vm69_vm6, %v98_v28, %v65_v27  ;;  %v75_v32 = vsel %vm69_vm6, %v99_v29, %v68_v30 }
   0xd   :  { %v76_v33 = vmul.f32 %v72_v31, %v22_v3 }
   0xf   :  { %v77_v34 = vadd.f32 %v76_v33, %v75_v32 }
  0x11   :  { %78 = vst [vmem:[%s186_s4] sm:$0x3] %v77_v34 }

</bundles_post_ra>
